<compile_context>
chip_gen: v7x
topology: tpu7x:2x2x1
jax: 0.10.0
libtpu: 0.0.40
codegen_flags: <defaults>
</compile_context>

<pallas_src>
import math

import jax
import jax.numpy as jnp
from jax.experimental import pallas as pl
from jax.experimental.pallas import tpu as pltpu


def _flash_sdpa_kernel(q_ref, k_ref, v_ref, mask_ref, o_ref,
                       m_sc, l_sc, acc_sc):
    """One (G, tq, tk) flash-attention tile.

    q_ref:    (G, tq, d_k) bf16 (pre-scaled)   k_ref: (G, tk, d_k) bf16
    v_ref:    (G, tk, d_v) bf16                mask_ref: (G or 1, tq, tk) int
    o_ref:    (1, tq, G*d_v)                   m_sc/l_sc: (G, tq, 1) f32
    acc_sc:   (G, tq, d_v) f32
    """
    g_size = acc_sc.shape[0]
    d_v = acc_sc.shape[-1]
    ki = pl.program_id(2)

    @pl.when(ki == 0)
    def _init():
        m_sc[...] = jnp.full(m_sc.shape, -jnp.inf, dtype=m_sc.dtype)
        l_sc[...] = jnp.zeros(l_sc.shape, dtype=l_sc.dtype)
        acc_sc[...] = jnp.zeros(acc_sc.shape, dtype=acc_sc.dtype)

    # QK^T: bf16 operands, f32 accumulation on the MXU; d_k contraction is
    # expressed directly (no in-kernel transpose).  Scale already folded in Q.
    s = jnp.einsum("gqd,gkd->gqk", q_ref[...], k_ref[...],
                   preferred_element_type=jnp.float32)

    # masked_fill_(attn_mask, -1e9); nonzero == masked.  Head-broadcast masks
    # arrive as a (1, tq, tk) block and are replicated across the G heads here
    # (no H-fold HBM traffic).
    masked = mask_ref[...] != 0
    if masked.shape[0] != s.shape[0]:
        masked = jnp.broadcast_to(masked, s.shape)
    s = jnp.where(masked, jnp.float32(-1e9), s)

    # Online softmax update (f32 state).
    m_prev = m_sc[...]
    m_new = jnp.maximum(m_prev, jnp.max(s, axis=-1, keepdims=True))
    alpha = jnp.exp(m_prev - m_new)           # == 0 on the first tile
    p = jnp.exp(s - m_new)
    l_sc[...] = alpha * l_sc[...] + jnp.sum(p, axis=-1, keepdims=True)
    pv = jnp.einsum("gqk,gkd->gqd", p.astype(v_ref.dtype), v_ref[...],
                    preferred_element_type=jnp.float32)
    acc_sc[...] = alpha * acc_sc[...] + pv
    m_sc[...] = m_new

    @pl.when(ki == pl.num_programs(2) - 1)
    def _finalize():
        # Normalize and pack the G heads into the lane-dense (tq, G*d_v)
        # output slab.  The per-g stores happen only at finalize (amortized
        # over all S_k tiles); the HBM writeback of o_ref is a dense,
        # 128-multiple-wide slab.
        for g in range(g_size):
            inv = pl.reciprocal(l_sc[g], approx=False)          # (tq, 1), EUP
            o_ref[0, :, g * d_v:(g + 1) * d_v] = (
                acc_sc[g] * inv).astype(o_ref.dtype)


def _hw_config():
    """Per-generation tiling targets.  v5e/v6e have 128 MiB VMEM per core and
    benefit from big tiles + a high scoped-VMEM cap; v7x has only 64 MiB per
    TensorCore, so stay conservative (its 3.2 TB/s HBM makes smaller tiles
    cheap anyway)."""
    vmem_cap = 64 * 1024 * 1024
    try:
        vmem_cap = pltpu.get_tpu_info().vmem_capacity_bytes
    except Exception:       # unknown generation -> conservative defaults
        pass
    if vmem_cap >= 100 * 1024 * 1024:       # v5e / v6e (128 MiB VMEM)
        return dict(tq_target=512, tk_target=1024,
                    vmem_limit=96 * 1024 * 1024,
                    score_budget=8 * 1024 * 1024)
    return dict(tq_target=256, tk_target=1024,   # v7x (64 MiB VMEM) / unknown
                vmem_limit=48 * 1024 * 1024,
                score_budget=6 * 1024 * 1024)


def _pick_seq_tile(s, target, multiples):
    """Largest divisor of `s` that is <= target and a multiple of one of
    `multiples` (tried in order); otherwise the full extent."""
    if s <= target:
        return s
    for m in multiples:
        t = (target // m) * m
        while t >= m:
            if s % t == 0:
                return t
            t -= m
    return s


def _pick_group(BH, H, d_v, qsteps, tq, tk, mask_per_head, score_budget_bytes):
    """Number of (b, h) slices folded into one grid step.

    Chosen so the output slab's last dim G*d_v is a multiple of 128
    (lane-dense stores), while (a) the f32 score tile G*tq*tk stays inside a
    VMEM budget, (b) G divides the head extent the mask is indexed over, and
    (c) at least two parallel grid steps remain for v7x's two TensorCores."""
    if d_v % 128 == 0 or BH == 1:
        return 1
    base = 128 // math.gcd(128, d_v)      # smallest G with (G*d_v) % 128 == 0
    max_lane_g = max(base, 512 // max(d_v, 1))        # soft cap on slab width
    max_score_g = max(1, score_budget_bytes // (4 * tq * tk))
    limit = BH if mask_per_head else H    # broadcast mask: group within batch
    hi = min(max_lane_g, max_score_g, limit)
    cands = [g for g in range(base, hi + 1, base) if limit % g == 0]
    if not cands:
        return 1
    good = [g for g in cands if (BH // g) * max(qsteps, 1) >= 2]
    return max(good) if good else min(cands)


def scaled_dot_product_attention(Q, K, V, attn_mask):
    """Q, K: [B,H,S_q,d_k] / [B,H,S_k,d_k]; V: [B,H,S_k,d_v];
    attn_mask: bool/int, [B,H,S_q,S_k], [B,1,S_q,S_k], [B,S_q,S_k], [S_q,S_k]."""
    B, H, S_q, d_k = Q.shape
    S_k = K.shape[2]
    d_v = V.shape[3]
    BH = B * H
    scale = 1.0 / math.sqrt(d_k)

    cfg = _hw_config()
    # tq: sublane / MXU-M dim -> prefer multiples of 128, fall back to 8/full.
    # tk: lane dim of the score/mask tiles -> multiple of 128 or full.
    tq = _pick_seq_tile(S_q, cfg["tq_target"], (128, 8))
    tk = _pick_seq_tile(S_k, cfg["tk_target"], (128,))

    # ---- mask prep: exploit head/batch broadcast, avoid extra copies. ----
    am = attn_mask
    if am.ndim == 2:
        am = am.reshape(1, S_q, S_k)
        mask_per_head = False
    elif am.ndim == 3:
        mask_per_head = False
    elif am.shape[1] == 1:
        am = am.reshape(am.shape[0], S_q, S_k)
        mask_per_head = False
    else:
        am = am.reshape(BH, S_q, S_k)
        mask_per_head = True
    if am.dtype == jnp.bool_:
        # TODO(synk): pass the bool array (already 1 byte/elem) straight
        # through once Mosaic bool block inputs are universally supported;
        # this compatibility cast is the only extra pass over the mask stream.
        am = am.astype(jnp.int8)

    G = _pick_group(BH, H, d_v, S_q // tq, tq, tk, mask_per_head,
                    cfg["score_budget"])
    grid = (BH // G, S_q // tq, S_k // tk)

    # bf16 inputs for the MXU (f32 accumulation in-kernel); 1/sqrt(d_k) is
    # folded into the cast of Q so the kernel never rescales.
    q = (Q.reshape(BH, S_q, d_k) * scale).astype(jnp.bfloat16)
    k = K.reshape(BH, S_k, d_k).astype(jnp.bfloat16)
    v = V.reshape(BH, S_k, d_v).astype(jnp.bfloat16)

    if mask_per_head:
        mask_spec = pl.BlockSpec((G, tq, tk), lambda g, qi, ki: (g, qi, ki))
    elif am.shape[0] == 1:
        mask_spec = pl.BlockSpec((1, tq, tk), lambda g, qi, ki: (0, qi, ki))
    else:
        # G divides H here, so all heads of a group share one batch index.
        mask_spec = pl.BlockSpec((1, tq, tk),
                                 lambda g, qi, ki: ((g * G) // H, qi, ki))

    out = pl.pallas_call(
        _flash_sdpa_kernel,
        out_shape=jax.ShapeDtypeStruct((BH // G, S_q, G * d_v), Q.dtype),
        grid_spec=pltpu.PrefetchScalarGridSpec(
            num_scalar_prefetch=0,
            grid=grid,
            in_specs=[
                pl.BlockSpec((G, tq, d_k), lambda g, qi, ki: (g, qi, 0)),
                pl.BlockSpec((G, tk, d_k), lambda g, qi, ki: (g, ki, 0)),
                pl.BlockSpec((G, tk, d_v), lambda g, qi, ki: (g, ki, 0)),
                mask_spec,
            ],
            out_specs=pl.BlockSpec((1, tq, G * d_v),
                                   lambda g, qi, ki: (g, qi, 0)),
            scratch_shapes=[
                pltpu.VMEM((G, tq, 1), jnp.float32),    # running max m
                pltpu.VMEM((G, tq, 1), jnp.float32),    # running sum l
                pltpu.VMEM((G, tq, d_v), jnp.float32),  # output accumulator
            ],
        ),
        compiler_params=pltpu.CompilerParams(
            dimension_semantics=("parallel", "parallel", "arbitrary"),
            vmem_limit_bytes=cfg["vmem_limit"],
        ),
    )(q, k, v, am)

    # Un-fold the lane-dense (BH//G, S_q, G*d_v) slab back to [B, H, S_q, d_v]
    # (layout plumbing only; heads were grouped as consecutive flat indices).
    out = jnp.transpose(out.reshape(BH // G, S_q, G, d_v), (0, 2, 1, 3))
    return out.reshape(B, H, S_q, d_v)


def _reference(Q, K, V, attn_mask):
    d_k = Q.shape[-1]
    scores = jnp.matmul(Q, jnp.swapaxes(K, -1, -2)) / jnp.sqrt(jnp.float32(d_k))
    scores = jnp.where(attn_mask, -1e9, scores)
    attn = jax.nn.softmax(scores, axis=-1)
    return jnp.matmul(attn, V)


if __name__ == "__main__":
    key = jax.random.PRNGKey(0)
    kq, kk, kv, km = jax.random.split(key, 4)

    B, H, S, d_k, d_v = 2, 4, 8, 32, 32
    Q = jax.random.normal(kq, (B, H, S, d_k), dtype=jnp.float32)
    K = jax.random.normal(kk, (B, H, S, d_k), dtype=jnp.float32)
    V = jax.random.normal(kv, (B, H, S, d_v), dtype=jnp.float32)
    # Boolean mask, True = masked position (e.g. padding mask).
    attn_mask = jax.random.bernoulli(km, p=0.25, shape=(B, H, S, S))

    out = scaled_dot_product_attention(Q, K, V, attn_mask)
    out = jax.block_until_ready(out)

    ref = _reference(Q, K, V, attn_mask)
    assert out.shape == (B, H, S, d_v)
    # Tolerance covers the bf16 MXU inputs (accumulation stays f32) and the
    # online-softmax accumulation order.
    assert jnp.allclose(out, ref, atol=2e-2, rtol=2e-2), "mismatch vs reference"

    print("KERNEL_OK")
</pallas_src>

<mosaic_0001>
module attributes {stable_mosaic.version = 11 : i64} {
  func.func @_flash_sdpa_kernel(%arg0: i32, %arg1: i32, %arg2: i32, %arg3: memref<4x8x32xbf16, #tpu.memory_space<vmem>>, %arg4: memref<4x8x32xbf16, #tpu.memory_space<vmem>>, %arg5: memref<4x8x32xbf16, #tpu.memory_space<vmem>>, %arg6: memref<4x8x8xi8, #tpu.memory_space<vmem>>, %arg7: memref<1x8x128xf32, #tpu.memory_space<vmem>>, %arg8: memref<4x8x1xf32, #tpu.memory_space<vmem>>, %arg9: memref<4x8x1xf32, #tpu.memory_space<vmem>>, %arg10: memref<4x8x32xf32, #tpu.memory_space<vmem>>) attributes {dimension_semantics = [#tpu.dimension_semantics<parallel>, #tpu.dimension_semantics<parallel>, #tpu.dimension_semantics<arbitrary>], iteration_bounds = array<i64: 2, 1, 1>, scalar_prefetch = 0 : i64, scratch_operands = 3 : i64, tpu.core_type = #tpu.core_type<tc>, window_params = [{transform_indices = @transform_0, window_bounds = array<i64: 4, 8, 32>}, {transform_indices = @transform_1, window_bounds = array<i64: 4, 8, 32>}, {transform_indices = @transform_2, window_bounds = array<i64: 4, 8, 32>}, {transform_indices = @transform_3, window_bounds = array<i64: 4, 8, 8>}, {transform_indices = @transform_4, window_bounds = array<i64: 1, 8, 128>}]} {
    %c0_i32 = arith.constant 0 : i32
    %0 = arith.cmpi eq, %arg2, %c0_i32 : i32
    %1 = arith.extui %0 : i1 to i32
    %c0_i32_0 = arith.constant 0 : i32
    %2 = arith.cmpi ne, %1, %c0_i32_0 : i32
    scf.if %2 {
      %cst_36 = arith.constant 0xFF800000 : f32
      %38 = vector.broadcast %cst_36 : f32 to vector<4x8x1xf32>
      %c0_37 = arith.constant 0 : index
      %c0_38 = arith.constant 0 : index
      %c0_39 = arith.constant 0 : index
      %39 = vector.load %arg8[%c0_37, %c0_38, %c0_39] : memref<4x8x1xf32, #tpu.memory_space<vmem>>, vector<4x8x1xf32>
      tpu.vector_store %arg8[%c0_37, %c0_38, %c0_39], %38 {strides = array<i32>} : memref<4x8x1xf32, #tpu.memory_space<vmem>>, vector<4x8x1xf32>,
      %cst_40 = arith.constant 0.000000e+00 : f32
      %40 = vector.broadcast %cst_40 : f32 to vector<4x8x1xf32>
      %c0_41 = arith.constant 0 : index
      %c0_42 = arith.constant 0 : index
      %c0_43 = arith.constant 0 : index
      %41 = vector.load %arg9[%c0_41, %c0_42, %c0_43] : memref<4x8x1xf32, #tpu.memory_space<vmem>>, vector<4x8x1xf32>
      tpu.vector_store %arg9[%c0_41, %c0_42, %c0_43], %40 {strides = array<i32>} : memref<4x8x1xf32, #tpu.memory_space<vmem>>, vector<4x8x1xf32>,
      %cst_44 = arith.constant 0.000000e+00 : f32
      %42 = vector.broadcast %cst_44 : f32 to vector<4x8x32xf32>
      %c0_45 = arith.constant 0 : index
      %c0_46 = arith.constant 0 : index
      %c0_47 = arith.constant 0 : index
      %43 = vector.load %arg10[%c0_45, %c0_46, %c0_47] : memref<4x8x32xf32, #tpu.memory_space<vmem>>, vector<4x8x32xf32>
      tpu.vector_store %arg10[%c0_45, %c0_46, %c0_47], %42 {strides = array<i32>} : memref<4x8x32xf32, #tpu.memory_space<vmem>>, vector<4x8x32xf32>,
    } else {
    }
    %c0 = arith.constant 0 : index
    %c0_1 = arith.constant 0 : index
    %c0_2 = arith.constant 0 : index
    %3 = vector.load %arg3[%c0, %c0_1, %c0_2] : memref<4x8x32xbf16, #tpu.memory_space<vmem>>, vector<4x8x32xbf16>
    %c0_3 = arith.constant 0 : index
    %c0_4 = arith.constant 0 : index
    %c0_5 = arith.constant 0 : index
    %4 = vector.load %arg4[%c0_3, %c0_4, %c0_5] : memref<4x8x32xbf16, #tpu.memory_space<vmem>>, vector<4x8x32xbf16>
    "tpu.trace_start"() <{level = 10 : i32, message = "gqd,gkd->gqk"}> : () -> ()
    %cst = arith.constant dense<0.000000e+00> : vector<4x8x8xf32>
    %5 = tpu.matmul %3, %4, %cst {dimension_numbers = #tpu.dot_dimension_numbers<[2], [2], [1], [1], [0, 0, 0, 1, 1, 1], [0], [0]>} : vector<4x8x32xbf16>, vector<4x8x32xbf16>, vector<4x8x8xf32> -> vector<4x8x8xf32>
    "tpu.trace_stop"() : () -> ()
    %c0_6 = arith.constant 0 : index
    %c0_7 = arith.constant 0 : index
    %c0_8 = arith.constant 0 : index
    %6 = vector.load %arg6[%c0_6, %c0_7, %c0_8] : memref<4x8x8xi8, #tpu.memory_space<vmem>>, vector<4x8x8xi8>
    %c0_i8 = arith.constant 0 : i8
    %7 = vector.broadcast %c0_i8 : i8 to vector<4x8x8xi8>
    %8 = arith.cmpi ne, %6, %7 : vector<4x8x8xi8>
    %cst_9 = arith.constant -1.000000e+09 : f32
    %9 = vector.broadcast %cst_9 : f32 to vector<4x8x8xf32>
    %10 = arith.select %8, %9, %5 : vector<4x8x8xi1>, vector<4x8x8xf32>
    %c0_10 = arith.constant 0 : index
    %c0_11 = arith.constant 0 : index
    %c0_12 = arith.constant 0 : index
    %11 = vector.load %arg8[%c0_10, %c0_11, %c0_12] : memref<4x8x1xf32, #tpu.memory_space<vmem>>, vector<4x8x1xf32>
    %cst_13 = arith.constant dense<0xFF800000> : vector<4x8xf32>
    %12 = vector.multi_reduction <maximumf>, %10, %cst_13 [2] : vector<4x8x8xf32> to vector<4x8xf32>
    %13 = vector.shape_cast %12 : vector<4x8xf32> to vector<4x8x1xf32>
    %14 = arith.maximumf %11, %13 : vector<4x8x1xf32>
    %15 = arith.subf %11, %14 : vector<4x8x1xf32>
    %16 = math.exp %15 : vector<4x8x1xf32>
    %17 = vector.broadcast %14 : vector<4x8x1xf32> to vector<4x8x8xf32>
    %18 = arith.subf %10, %17 : vector<4x8x8xf32>
    %19 = math.exp %18 : vector<4x8x8xf32>
    %c0_14 = arith.constant 0 : index
    %c0_15 = arith.constant 0 : index
    %c0_16 = arith.constant 0 : index
    %20 = vector.load %arg9[%c0_14, %c0_15, %c0_16] : memref<4x8x1xf32, #tpu.memory_space<vmem>>, vector<4x8x1xf32>
    %21 = arith.mulf %16, %20 : vector<4x8x1xf32>
    %cst_17 = arith.constant dense<0.000000e+00> : vector<4x8xf32>
    %22 = vector.multi_reduction <add>, %19, %cst_17 [2] : vector<4x8x8xf32> to vector<4x8xf32>
    %23 = vector.shape_cast %22 : vector<4x8xf32> to vector<4x8x1xf32>
    %24 = arith.addf %21, %23 : vector<4x8x1xf32>
    %c0_18 = arith.constant 0 : index
    %c0_19 = arith.constant 0 : index
    %c0_20 = arith.constant 0 : index
    %25 = vector.load %arg9[%c0_18, %c0_19, %c0_20] : memref<4x8x1xf32, #tpu.memory_space<vmem>>, vector<4x8x1xf32>
    tpu.vector_store %arg9[%c0_18, %c0_19, %c0_20], %24 {strides = array<i32>} : memref<4x8x1xf32, #tpu.memory_space<vmem>>, vector<4x8x1xf32>,
    %26 = arith.truncf %19 : vector<4x8x8xf32> to vector<4x8x8xbf16>
    %c0_21 = arith.constant 0 : index
    %c0_22 = arith.constant 0 : index
    %c0_23 = arith.constant 0 : index
    %27 = vector.load %arg5[%c0_21, %c0_22, %c0_23] : memref<4x8x32xbf16, #tpu.memory_space<vmem>>, vector<4x8x32xbf16>
    "tpu.trace_start"() <{level = 10 : i32, message = "gqk,gkd->gqd"}> : () -> ()
    %cst_24 = arith.constant dense<0.000000e+00> : vector<4x8x32xf32>
    %28 = tpu.matmul %26, %27, %cst_24 {dimension_numbers = #tpu.dot_dimension_numbers<[2], [1], [1], [2], [0, 0, 0, 1, 1, 2], [0], [0]>} : vector<4x8x8xbf16>, vector<4x8x32xbf16>, vector<4x8x32xf32> -> vector<4x8x32xf32>
    "tpu.trace_stop"() : () -> ()
    %c0_25 = arith.constant 0 : index
    %c0_26 = arith.constant 0 : index
    %c0_27 = arith.constant 0 : index
    %29 = vector.load %arg10[%c0_25, %c0_26, %c0_27] : memref<4x8x32xf32, #tpu.memory_space<vmem>>, vector<4x8x32xf32>
    %30 = vector.broadcast %16 : vector<4x8x1xf32> to vector<4x8x32xf32>
    %31 = arith.mulf %30, %29 : vector<4x8x32xf32>
    %32 = arith.addf %31, %28 : vector<4x8x32xf32>
    %c0_28 = arith.constant 0 : index
    %c0_29 = arith.constant 0 : index
    %c0_30 = arith.constant 0 : index
    %33 = vector.load %arg10[%c0_28, %c0_29, %c0_30] : memref<4x8x32xf32, #tpu.memory_space<vmem>>, vector<4x8x32xf32>
    tpu.vector_store %arg10[%c0_28, %c0_29, %c0_30], %32 {strides = array<i32>} : memref<4x8x32xf32, #tpu.memory_space<vmem>>, vector<4x8x32xf32>,
    %c0_31 = arith.constant 0 : index
    %c0_32 = arith.constant 0 : index
    %c0_33 = arith.constant 0 : index
    %34 = vector.load %arg8[%c0_31, %c0_32, %c0_33] : memref<4x8x1xf32, #tpu.memory_space<vmem>>, vector<4x8x1xf32>
    tpu.vector_store %arg8[%c0_31, %c0_32, %c0_33], %14 {strides = array<i32>} : memref<4x8x1xf32, #tpu.memory_space<vmem>>, vector<4x8x1xf32>,
    %c0_i32_34 = arith.constant 0 : i32
    %35 = arith.cmpi eq, %arg2, %c0_i32_34 : i32
    %36 = arith.extui %35 : i1 to i32
    %c0_i32_35 = arith.constant 0 : i32
    %37 = arith.cmpi ne, %36, %c0_i32_35 : i32
    scf.if %37 {
      %c0_36 = arith.constant 0 : index
      %c0_37 = arith.constant 0 : index
      %c0_38 = arith.constant 0 : index
      %38 = vector.load %arg9[%c0_36, %c0_37, %c0_38] : memref<4x8x1xf32, #tpu.memory_space<vmem>>, vector<1x8x1xf32>
      %39 = vector.shape_cast %38 : vector<1x8x1xf32> to vector<8x1xf32>
      %40 = tpu.reciprocal %39 : vector<8x1xf32> -> vector<8x1xf32>
      %c0_39 = arith.constant 0 : index
      %c0_40 = arith.constant 0 : index
      %c0_41 = arith.constant 0 : index
      %41 = vector.load %arg10[%c0_39, %c0_40, %c0_41] : memref<4x8x32xf32, #tpu.memory_space<vmem>>, vector<1x8x32xf32>
      %42 = vector.shape_cast %41 : vector<1x8x32xf32> to vector<8x32xf32>
      %43 = vector.broadcast %40 : vector<8x1xf32> to vector<8x32xf32>
      %44 = arith.mulf %42, %43 : vector<8x32xf32>
      %c0_42 = arith.constant 0 : index
      %c0_43 = arith.constant 0 : index
      %c0_44 = arith.constant 0 : index
      %45 = vector.load %arg7[%c0_42, %c0_43, %c0_44] : memref<1x8x128xf32, #tpu.memory_space<vmem>>, vector<1x8x32xf32>
      %46 = vector.shape_cast %45 : vector<1x8x32xf32> to vector<8x32xf32>
      %47 = vector.shape_cast %44 : vector<8x32xf32> to vector<1x8x32xf32>
      tpu.vector_store %arg7[%c0_42, %c0_43, %c0_44], %47 {strides = array<i32>} : memref<1x8x128xf32, #tpu.memory_space<vmem>>, vector<1x8x32xf32>,
      %c1 = arith.constant 1 : index
      %c0_45 = arith.constant 0 : index
      %c0_46 = arith.constant 0 : index
      %48 = vector.load %arg9[%c1, %c0_45, %c0_46] : memref<4x8x1xf32, #tpu.memory_space<vmem>>, vector<1x8x1xf32>
      %49 = vector.shape_cast %48 : vector<1x8x1xf32> to vector<8x1xf32>
      %50 = tpu.reciprocal %49 : vector<8x1xf32> -> vector<8x1xf32>
      %c1_47 = arith.constant 1 : index
      %c0_48 = arith.constant 0 : index
      %c0_49 = arith.constant 0 : index
      %51 = vector.load %arg10[%c1_47, %c0_48, %c0_49] : memref<4x8x32xf32, #tpu.memory_space<vmem>>, vector<1x8x32xf32>
      %52 = vector.shape_cast %51 : vector<1x8x32xf32> to vector<8x32xf32>
      %53 = vector.broadcast %50 : vector<8x1xf32> to vector<8x32xf32>
      %54 = arith.mulf %52, %53 : vector<8x32xf32>
      %c0_50 = arith.constant 0 : index
      %c0_51 = arith.constant 0 : index
      %c32 = arith.constant 32 : index
      %55 = vector.load %arg7[%c0_50, %c0_51, %c32] : memref<1x8x128xf32, #tpu.memory_space<vmem>>, vector<1x8x32xf32>
      %56 = vector.shape_cast %55 : vector<1x8x32xf32> to vector<8x32xf32>
      %57 = vector.shape_cast %54 : vector<8x32xf32> to vector<1x8x32xf32>
      tpu.vector_store %arg7[%c0_50, %c0_51, %c32], %57 {strides = array<i32>} : memref<1x8x128xf32, #tpu.memory_space<vmem>>, vector<1x8x32xf32>,
      %c2 = arith.constant 2 : index
      %c0_52 = arith.constant 0 : index
      %c0_53 = arith.constant 0 : index
      %58 = vector.load %arg9[%c2, %c0_52, %c0_53] : memref<4x8x1xf32, #tpu.memory_space<vmem>>, vector<1x8x1xf32>
      %59 = vector.shape_cast %58 : vector<1x8x1xf32> to vector<8x1xf32>
      %60 = tpu.reciprocal %59 : vector<8x1xf32> -> vector<8x1xf32>
      %c2_54 = arith.constant 2 : index
      %c0_55 = arith.constant 0 : index
      %c0_56 = arith.constant 0 : index
      %61 = vector.load %arg10[%c2_54, %c0_55, %c0_56] : memref<4x8x32xf32, #tpu.memory_space<vmem>>, vector<1x8x32xf32>
      %62 = vector.shape_cast %61 : vector<1x8x32xf32> to vector<8x32xf32>
      %63 = vector.broadcast %60 : vector<8x1xf32> to vector<8x32xf32>
      %64 = arith.mulf %62, %63 : vector<8x32xf32>
      %c0_57 = arith.constant 0 : index
      %c0_58 = arith.constant 0 : index
      %c64 = arith.constant 64 : index
      %65 = vector.load %arg7[%c0_57, %c0_58, %c64] : memref<1x8x128xf32, #tpu.memory_space<vmem>>, vector<1x8x32xf32>
      %66 = vector.shape_cast %65 : vector<1x8x32xf32> to vector<8x32xf32>
      %67 = vector.shape_cast %64 : vector<8x32xf32> to vector<1x8x32xf32>
      tpu.vector_store %arg7[%c0_57, %c0_58, %c64], %67 {strides = array<i32>} : memref<1x8x128xf32, #tpu.memory_space<vmem>>, vector<1x8x32xf32>,
      %c3 = arith.constant 3 : index
      %c0_59 = arith.constant 0 : index
      %c0_60 = arith.constant 0 : index
      %68 = vector.load %arg9[%c3, %c0_59, %c0_60] : memref<4x8x1xf32, #tpu.memory_space<vmem>>, vector<1x8x1xf32>
      %69 = vector.shape_cast %68 : vector<1x8x1xf32> to vector<8x1xf32>
      %70 = tpu.reciprocal %69 : vector<8x1xf32> -> vector<8x1xf32>
      %c3_61 = arith.constant 3 : index
      %c0_62 = arith.constant 0 : index
      %c0_63 = arith.constant 0 : index
      %71 = vector.load %arg10[%c3_61, %c0_62, %c0_63] : memref<4x8x32xf32, #tpu.memory_space<vmem>>, vector<1x8x32xf32>
      %72 = vector.shape_cast %71 : vector<1x8x32xf32> to vector<8x32xf32>
      %73 = vector.broadcast %70 : vector<8x1xf32> to vector<8x32xf32>
      %74 = arith.mulf %72, %73 : vector<8x32xf32>
      %c0_64 = arith.constant 0 : index
      %c0_65 = arith.constant 0 : index
      %c96 = arith.constant 96 : index
      %75 = vector.load %arg7[%c0_64, %c0_65, %c96] : memref<1x8x128xf32, #tpu.memory_space<vmem>>, vector<1x8x32xf32>
      %76 = vector.shape_cast %75 : vector<1x8x32xf32> to vector<8x32xf32>
      %77 = vector.shape_cast %74 : vector<8x32xf32> to vector<1x8x32xf32>
      tpu.vector_store %arg7[%c0_64, %c0_65, %c96], %77 {strides = array<i32>} : memref<1x8x128xf32, #tpu.memory_space<vmem>>, vector<1x8x32xf32>,
    } else {
    }
    return
  }
  func.func @transform_0(%arg0: i32, %arg1: i32, %arg2: i32) -> (i32, i32, i32) {
    %c0_i32 = arith.constant 0 : i32
    %c0_i32_0 = arith.constant 0 : i32
    return %arg0, %arg1, %c0_i32 : i32, i32, i32
  }
  func.func @transform_1(%arg0: i32, %arg1: i32, %arg2: i32) -> (i32, i32, i32) {
    %c0_i32 = arith.constant 0 : i32
    %c0_i32_0 = arith.constant 0 : i32
    return %arg0, %arg2, %c0_i32 : i32, i32, i32
  }
  func.func @transform_2(%arg0: i32, %arg1: i32, %arg2: i32) -> (i32, i32, i32) {
    %c0_i32 = arith.constant 0 : i32
    %c0_i32_0 = arith.constant 0 : i32
    return %arg0, %arg2, %c0_i32 : i32, i32, i32
  }
  func.func @transform_3(%arg0: i32, %arg1: i32, %arg2: i32) -> (i32, i32, i32) {
    %c0_i32 = arith.constant 0 : i32
    return %arg0, %arg1, %arg2 : i32, i32, i32
  }
  func.func @transform_4(%arg0: i32, %arg1: i32, %arg2: i32) -> (i32, i32, i32) {
    %c0_i32 = arith.constant 0 : i32
    %c0_i32_0 = arith.constant 0 : i32
    return %arg0, %arg1, %c0_i32 : i32, i32, i32
  }
}

</mosaic_0001>

<bundles_post_ra>
// kernel: tpu_custom_call.1
= control target key start
LH: loop header
LB: loop body
LE: loop exit
PB: predicated region body
PF: predicated region fallthrough
CT: control target
= control target key end

     0   :  { %s2102_s0 = inlined_call_operand.hbm [shape: bf16[8,8,32], index: 0, kind: input, shape index: {}]   ;;  %s2103_s1 = inlined_call_operand.hbm [shape: bf16[8,8,32], index: 1, kind: input, shape index: {}]   ;;  %s2104_s2 = inlined_call_operand.hbm [shape: bf16[8,8,32], index: 2, kind: input, shape index: {}]   ;;  %s2105_s3 = inlined_call_operand.hbm [shape: s8[8,8,8], index: 3, kind: input, shape index: {}]   ;;  %s2106_s4 = inlined_call_operand.hbm [shape: f32[2,8,128], index: 4, kind: output, shape index: {}]  }
   0x1   :  { %2118 = sst [smem:[#allocation23_spill]] %s2102_s0 }
   0x2   :  { %2119 = sst [smem:[#allocation24_spill]] %s2103_s1 }
   0x3   :  { %9 = vsyncpa [#allocation6], 0 }
   0x4   :  { %11 = vsyncpa [#allocation6 + $0x1], 0 }
   0x5   :  { %12 = vsyncpa [#allocation9], 0 }
   0x6   :  { %14 = vsyncpa [#allocation9 + $0x1], 0 }
   0x7   :  { %15 = vsyncpa [#allocation12], 0 }
   0x8   :  { %17 = vsyncpa [#allocation12 + $0x1], 0 }
   0x9   :  { %18 = vsyncpa [#allocation7], 0 }
   0xa   :  { %20 = vsyncpa [#allocation7 + $0x1], 0  ;;  %s1643_s15 = smov 0   ;;  %s1645_s16 = smov 0  }
   0xb   :  { %s1647_s17 = smov 0   ;;  %s1649_s18 = smov 0  }
   0xc   :  { %s1651_s19 = smov 0   ;;  %s1653_s20 = smov 0  }
   0xd LB: > { %2120 = sst [smem:[#allocation18_spill]] %s1588_s17  ;;  %s1674_s21 = sadd.s32 4294967295, %s1600_s20   ;;  %s1600_s20 = sphi %s1653_s20, %s26_s20   ;;  %s1596_s19 = sphi %s1651_s19, %s2151_s19   ;;  %s1592_s18 = sphi %s1649_s18, %s2150_s18   ;;  %s1588_s17 = sphi %s1647_s17, %s2146_s17   ;;  %s1584_s16 = sphi %s1645_s16, %s2149_s16   ;;  %s1580_s15 = sphi %s1643_s15, %s2148_s15  }
   0xe   : > { %2121 = sst [smem:[#allocation19_spill]] %s1600_s20  ;;  %s1175_s22 = sadd.s32 4294967294, %s1600_s20  }
   0xf   : > { %s45_s23 = sadd.s32 1, %s1596_s19  ;;  %s54_s24 = sadd.s32 1, %s1588_s17 }
  0x10   : > { %p47_p0 = scmp.ge.s32.totalorder %s45_s23, 2  ;;  %p61_p1 = scmp.ne.s32.totalorder %s1588_s17, %s1584_s16 }
  0x11   : > { %p62_p2 = scmp.eq.s32.totalorder %s1600_s20, 0  ;;  %p67_p3 = scmp.ne.s32.totalorder %s1584_s16, %s1580_s15 }
  0x12   : > { %s2153_s23 = smov (%p47_p0, %s45_s23), 0  ;;  %p68_p5 = scmp.eq.s32.totalorder %s1674_s21, 0 }
  0x13   : > { %2122 = sst [smem:[#allocation20_spill]] %s2153_s23  ;;  %p1686_p4 = por %p62_p2, %p61_p1 }
  0x14   : > { %s49_s26 = ssub.s32 %s1596_s19, %s2153_s23  ;;  %p179_p6 = scmp.eq.s32.totalorder %s1674_s21, 1 }
  0x15   : > { %p52_p7 = scmp.eq.s32.totalorder %s49_s26, 0  ;;  %p1694_p8 = por %p68_p5, %p67_p3 }
  0x16   : > { %p1698_p9 = por %p179_p6, %p61_p1  ;;  %p185_p10 = scmp.eq.s32.totalorder %s1175_s22, 1 }
  0x17   : > { %s2124_s27 = scalar_select %p1694_p8, 1, 0 }
  0x18   : > { %s2125_s28 = scalar_select %p1698_p9, 1, 0 }
  0x19   : > { %s1703_s29 = scalar_select %p52_p7, %s1588_s17, %s54_s24  }
  0x1a   : > { %p1705_p11 = por %p185_p10, %p67_p3  ;;  %p1303_p13 = scmp.lt.s32.totalorder %s1600_s20, 2 }
  0x1b   : > { %2126 = sst [smem:[#allocation21_spill]] %s1703_s29  ;;  %s1712_s5 = sand.u32 1, %s1588_s17  }
  0x1c   : > { %s2127_s30 = scalar_select %p1705_p11, 1, 0 }
  0x1d   : > { %s1715_s6 = sshll.u32 %s1712_s5, 4  ;;  %s1718_s7 = sshll.u32 %s1596_s19, 8 }
  0x1e   : > { %2128 = sst [smem:[#allocation22_spill]] %s2127_s30  ;;  %p1722_p0 = pnand %p1303_p13, %p1686_p4 }
  0x1f   : > { %s227_s9 = sand.u32 1, %s1600_s20   ;;  %s2130_s1 = sld [smem:[#allocation24_spill]] }
  0x20   : > { %s231_s13 = scalar_lea.vmem [#allocation8], %s1715_s6  ;;  %s1738_s22 = scalar_lea.sflag [#allocation9], %s227_s9 }
  0x21   : > { %s239_s14 = sshll.u32 %s231_s13, 4  ;;  %p1744_p4 = pneg %p1722_p0  ;;  %s1735_s14 = int_to_ptr.vmem [resolvable:$true] %s239_s14 }
  0x25   : > { %s1731_s12 = scalar_lea.hbm %s2130_s1, %s1718_s7  ;;  %s1395_s11 = scalar_lea.hbm %s2130_s1, 512 }
  0x26   : > { %s1390_s24 = scalar_lea.hbm %s1731_s12, 256  ;;  %p1396_p7 = scmp.lt.u32.totalorder %s1731_s12, %s2130_s1 }
  0x27   : > { %p1391_p3 = scmp.ne.s32.totalorder %s1731_s12, %s1390_s24  ;;  %p1397_p10 = scmp.lt.u32.totalorder %s1395_s11, %s1390_s24 }
  0x28   : > { %p1399_p12 = scmp.lt.u32.totalorder %s1390_s24, %s1731_s12 }
  0x29   : > { %p1393_p5 = pnand %p1744_p4, %p1391_p3  ;;  %p1398_p13 = por %p1397_p10, %p1396_p7 }
  0x2b   : > { %p1394_p6 = pneg %p1393_p5  ;;  %p1400_p1 = por %p1399_p12, %p1398_p13 }
  0x2d   : > { %p1401_p2 = pnand %p1400_p1, %p1394_p6 }
  0x2f   : > { %1404 = shalt.err (!%p1401_p2)
}
  0x30   : > { %s1405_s9 = scalar_lea.vmem %s1735_s14, 256  ;;  %s1602_s26 = smov [#allocation8]  }
  0x31   : > { %p1406_p3 = scmp.ne.s32.totalorder %s1735_s14, %s1405_s9  ;;  %s1410_s10 = sshll.u32 %s1602_s26, 4  ;;  %s1411_s10 = int_to_ptr.vmem [resolvable:$false] %s1410_s10 }
  0x32   : > { %s1412_s23 = scalar_lea.vmem %s1411_s10, 512  ;;  %p1413_p9 = scmp.lt.s32.totalorder %s1735_s14, %s1411_s10 }
  0x33   : > { %p1408_p5 = pnand %p1406_p3, %p1744_p4  ;;  %p1414_p8 = scmp.lt.s32.totalorder %s1412_s23, %s1405_s9 }
  0x35   : > { %p1409_p11 = pneg %p1408_p5  ;;  %p1415_p7 = por %p1414_p8, %p1413_p9 }
  0x37   : > { %p1416_p10 = pnand %p1415_p7, %p1409_p11 }
  0x39   : > { %1419 = shalt.err (!%p1416_p10)
}
  0x3a   : > { %s2110_s24 = smov 64   ;;  %s2112_s11 = smov 4  }
  0x3b   : > { %1292 = dma.hbm_to_vmem [thread:$0]  (!%p1722_p0), %s1731_s12, 256, %s1735_s14, %s1738_s22, %s2110_s24, %s2110_s24, %s2112_s11  }
  0x3c   : > { %p2132_p8 = scmp.lt.s32.totalorder %s1600_s20, 3  ;;  %p2133_p9 = scmp.ge.s32.totalorder %s1600_s20, 1 }
  0x3d   : > { %s2135_s0 = sld [smem:[#allocation23_spill]]  ;;  %s209_s23 = scalar_lea.vmem [#allocation5], %s1715_s6 }
  0x3e   : > { %p1775_p11 = pnand %p2133_p9, %p2132_p8  ;;  %s217_s1 = sshll.u32 %s209_s23, 4  ;;  %s1786_s1 = int_to_ptr.vmem [resolvable:$true] %s217_s1 }
  0x3f   : > { %s1792_s24 = scalar_lea.hbm %s2104_s2, %s1718_s7  ;;  %s206_s11 = scalar_lea.sflag [#allocation6], %s1712_s5 }
  0x40   : > { %s2134_s13 = scalar_select %p1775_p11, 1, 0 }
  0x43   : > { %s1783_s10 = scalar_lea.hbm %s2135_s0, %s1718_s7  ;;  %s1425_s17 = scalar_lea.hbm %s2135_s0, 512 }
  0x44   : > { %s1420_s29 = scalar_lea.hbm %s1783_s10, 256  ;;  %p1426_p6 = scmp.lt.u32.totalorder %s1783_s10, %s2135_s0 }
  0x45   : > { %p1421_p12 = scmp.ne.s32.totalorder %s1783_s10, %s1420_s29  ;;  %p1427_p13 = scmp.lt.u32.totalorder %s1425_s17, %s1420_s29 }
  0x46   : > { %p1429_p5 = scmp.lt.u32.totalorder %s1420_s29, %s1783_s10 }
  0x47   : > { %p1423_p1 = pnand %p1421_p12, %p1744_p4  ;;  %p1428_p3 = por %p1427_p13, %p1426_p6 }
  0x49   : > { %p1424_p2 = pneg %p1423_p1  ;;  %p1430_p7 = por %p1429_p5, %p1428_p3 }
  0x4b   : > { %p1431_p10 = pnand %p1430_p7, %p1424_p2 }
  0x4d   : > { %1434 = shalt.err (!%p1431_p10)
}
  0x4e   : > { %s1435_s7 = scalar_lea.vmem %s1786_s1, 256  ;;  %s1605_s23 = smov [#allocation5]  }
  0x4f   : > { %p1436_p8 = scmp.ne.s32.totalorder %s1786_s1, %s1435_s7  ;;  %s1440_s12 = sshll.u32 %s1605_s23, 4  ;;  %s1441_s12 = int_to_ptr.vmem [resolvable:$false] %s1440_s12 }
  0x50   : > { %s1442_s20 = scalar_lea.vmem %s1441_s12, 512  ;;  %p1443_p1 = scmp.lt.s32.totalorder %s1786_s1, %s1441_s12 }
  0x51   : > { %p1438_p9 = pnand %p1436_p8, %p1744_p4  ;;  %p1444_p11 = scmp.lt.s32.totalorder %s1442_s20, %s1435_s7 }
  0x53   : > { %p1439_p12 = pneg %p1438_p9  ;;  %p1445_p6 = por %p1444_p11, %p1443_p1 }
  0x55   : > { %p1446_p13 = pnand %p1445_p6, %p1439_p12 }
  0x57   : > { %1449 = shalt.err (!%p1446_p13)
}
  0x58   : > { %s2136_s17 = smov 4   ;;  %s2137_s29 = smov 64  }
  0x59   : > { %1289 = dma.hbm_to_vmem [thread:$0]  (!%p1722_p0), %s1783_s10, 256, %s1786_s1, %s206_s11, %s2137_s29, %s2137_s29, %s2136_s17  }
  0x5a   : > { %s253_s30 = scalar_lea.vmem [#allocation10], %s1715_s6  ;;  %s1187_s9 = sshll.u32 %s1712_s5, 3 }
  0x5b   : > { %s261_s14 = sshll.u32 %s253_s30, 4  ;;  %s1450_s26 = scalar_lea.hbm %s1792_s24, 256  ;;  %s1822_s14 = int_to_ptr.vmem [resolvable:$true] %s261_s14 }
  0x5c   : > { %p1451_p11 = scmp.ne.s32.totalorder %s1792_s24, %s1450_s26  ;;  %s1455_s12 = scalar_lea.hbm %s2104_s2, 512 }
  0x5d   : > { %p1456_p5 = scmp.lt.u32.totalorder %s1792_s24, %s2104_s2  ;;  %p1457_p7 = scmp.lt.u32.totalorder %s1455_s12, %s1450_s26 }
  0x5e   : > { %p1453_p2 = pnand %p1451_p11, %p1744_p4  ;;  %p1459_p8 = scmp.lt.u32.totalorder %s1450_s26, %s1792_s24 }
  0x5f   : > { %p1458_p10 = por %p1457_p7, %p1456_p5 }
  0x60   : > { %p1454_p3 = pneg %p1453_p2 }
  0x61   : > { %p1460_p9 = por %p1459_p8, %p1458_p10 }
  0x63   : > { %p1461_p12 = pnand %p1460_p9, %p1454_p3 }
  0x65   : > { %1464 = shalt.err (!%p1461_p12)
}
  0x66   : > { %s1465_s1 = scalar_lea.vmem %s1822_s14, 256  ;;  %s1606_s6 = smov [#allocation10]  }
  0x67   : > { %p1466_p1 = scmp.ne.s32.totalorder %s1822_s14, %s1465_s1  ;;  %s1470_s11 = sshll.u32 %s1606_s6, 4  ;;  %s1471_s11 = int_to_ptr.vmem [resolvable:$false] %s1470_s11 }
  0x68   : > { %s1472_s0 = scalar_lea.vmem %s1471_s11, 512  ;;  %p1473_p11 = scmp.lt.s32.totalorder %s1822_s14, %s1471_s11 }
  0x69   : > { %p1468_p6 = pnand %p1466_p1, %p1744_p4  ;;  %p1474_p2 = scmp.lt.s32.totalorder %s1472_s0, %s1465_s1 }
  0x6b   : > { %p1469_p13 = pneg %p1468_p6  ;;  %p1475_p5 = por %p1474_p2, %p1473_p11 }
  0x6d   : > { %p1476_p7 = pnand %p1475_p5, %p1469_p13 }
  0x6f   : > { %1479 = shalt.err (!%p1476_p7)
}
  0x70   : > { %1295 = dma.hbm_to_vmem [thread:$0]  (!%p1722_p0), %s1792_s24, 256, %s1822_s14, %s1738_s22, %s2137_s29, %s2137_s29, %s2136_s17  }
  0x71   : > { %s1211_s10 = sshll.u32 %s1596_s19, 7  ;;  %s275_s23 = scalar_lea.vmem [#allocation11], %s1187_s9 }
  0x72   : > { %s1854_s7 = scalar_lea.hbm %s2105_s3, %s1211_s10  ;;  %s284_s12 = sshll.u32 %s275_s23, 4  ;;  %s1858_s12 = int_to_ptr.vmem [resolvable:$true] %s284_s12 }
  0x73   : > { %s272_s20 = scalar_lea.sflag [#allocation12], %s1712_s5  ;;  %s1480_s1 = scalar_lea.hbm %s1854_s7, 128 }
  0x74   : > { %p1481_p3 = scmp.ne.s32.totalorder %s1854_s7, %s1480_s1  ;;  %s1485_s17 = scalar_lea.hbm %s2105_s3, 256 }
  0x75   : > { %p1486_p9 = scmp.lt.u32.totalorder %s1854_s7, %s2105_s3  ;;  %p1487_p12 = scmp.lt.u32.totalorder %s1485_s17, %s1480_s1 }
  0x76   : > { %p1483_p10 = pnand %p1481_p3, %p1744_p4  ;;  %p1489_p6 = scmp.lt.u32.totalorder %s1480_s1, %s1854_s7 }
  0x77   : > { %p1488_p1 = por %p1487_p12, %p1486_p9 }
  0x78   : > { %p1484_p8 = pneg %p1483_p10 }
  0x79   : > { %p1490_p13 = por %p1489_p6, %p1488_p1 }
  0x7b   : > { %p1491_p11 = pnand %p1490_p13, %p1484_p8 }
  0x7d   : > { %1494 = shalt.err (!%p1491_p11)
}
  0x7e   : > { %s1495_s9 = scalar_lea.vmem %s1858_s12, 128  ;;  %s1607_s6 = smov [#allocation11]  }
  0x7f   : > { %p1496_p2 = scmp.ne.s32.totalorder %s1858_s12, %s1495_s9  ;;  %s1500_s11 = sshll.u32 %s1607_s6, 4  ;;  %s1501_s11 = int_to_ptr.vmem [resolvable:$false] %s1500_s11 }
  0x80   : > { %s1502_s0 = scalar_lea.vmem %s1501_s11, 256  ;;  %p1503_p3 = scmp.lt.s32.totalorder %s1858_s12, %s1501_s11 }
  0x81   : > { %p1498_p5 = pnand %p1496_p2, %p1744_p4  ;;  %p1504_p10 = scmp.lt.s32.totalorder %s1502_s0, %s1495_s9 }
  0x83   : > { %p1499_p7 = pneg %p1498_p5  ;;  %p1505_p9 = por %p1504_p10, %p1503_p3 }
  0x85   : > { %p1506_p12 = pnand %p1505_p9, %p1499_p7 }
  0x87   : > { %1509 = shalt.err (!%p1506_p12)
}
  0x88   : > { %s1608_s10 = smov 32   ;;  %s1609_s30 = smov 2  }
  0x89   : > { %1298 = dma.hbm_to_vmem [thread:$0]  (!%p1722_p0), %s1854_s7, 128, %s1858_s12, %s272_s20, %s1608_s10, %s1608_s10, %s1609_s30  }
  0x8a   : > { %p2138_p4 = scmp.ne.s32.totalorder %s2134_s13, 0 }
  0x8b   : > { %s1887_s25 = sand.u32 (!%p2138_p4), 1, %s1584_s16   ;;  %p2139_p8 = scmp.ne.s32.totalorder (!%p2138_p4), %s2124_s27, 0 }
  0x8c   : > { %296 = sbr.rel (%p2138_p4) target bundleno = 1100 (0x44c), region = 36  ;;  %s1191_s26 = sshll.u32 (!%p2138_p4), %s1887_s25, 4 }
  0x8d   : > { %s299_s23 = scalar_lea.sflag (!%p2138_p4), [#allocation6], %s1887_s25  ;;  %s1891_s1 = scalar_lea.vmem (!%p2138_p4), [#allocation5], %s1191_s26 }
  0x93   : > { %1563 = dma.done.wait (%p2139_p8), %s299_s23, 256  }
  0x94   : > { %1565 = vsyncadd (%p2139_p8), %s299_s23, 4294967040  ;;  %s307_s5 = sand.u32 1, %s1674_s21   ;;  %s311_s13 = scalar_lea.vmem [#allocation8], %s1191_s26 }
  0x95   : > { %s308_s8 = scalar_lea.sflag [#allocation9], %s307_s5 }
  0x96   : > { %1567 = dma.done.wait (%p2139_p8), %s308_s8, 512  }
  0x97   : > { %1569 = vsyncadd (%p2139_p8), %s308_s8, 4294966784  ;;  %s1194_s7 = sshll.u32 %s1887_s25, 3  ;;  %s1903_s12 = scalar_lea.vmem [#allocation10], %s1191_s26 }
  0x98   : > { %s326_s20 = scalar_lea.sflag [#allocation12], %s1887_s25  ;;  %s1908_s22 = scalar_lea.vmem [#allocation11], %s1194_s7 }
  0x99   : > { %1571 = dma.done.wait (%p2139_p8), %s326_s20, 128  }
  0x9a   : > { %1573 = vsyncadd (%p2139_p8), %s326_s20, 4294967168  ;;  %vm389_vm0 = vcmask 261120   ;;  %v1610_v0 = vmov 0.0   ;;  %vm1611_vm1 = vmmov 0   ;;  %v398_v1 = vld [vmem:[%s311_s13] sm:$0xf] }
  0x9b   : > { %1228 = vmatprep.subr.bf16.mxu0 %v1610_v0  ;;  %390 = vst.msk [vmem:[#allocation4] sm:$0xff] %vm389_vm0, %v1610_v0  ;;  %391 = vst.msk [vmem:[#allocation4 + $0x8] sm:$0xff] %vm389_vm0, %v1610_v0  ;;  %1234 = vmatprep.subr.bf16.mxu1 %v1610_v0  ;;  %v399_v2 = vld [vmem:[%s311_s13 + $0x4] sm:$0xf]  ;;  %v407_v3 = vsel %vm389_vm0, %v398_v1, 0  ;;  %v1612_v13 = vmov 0  }
  0x9c   : > { %392 = vst.msk [vmem:[#allocation4 + $0x10] sm:$0xff] %vm389_vm0, %v1610_v0  ;;  %393 = vst.msk [vmem:[#allocation4 + $0x18] sm:$0xff] %vm389_vm0, %v1610_v0  ;;  %1230 = vmatprep.mubr.msk.bf16.mxu0 %vm1611_vm1, %v1610_v0  ;;  %1236 = vmatprep.mubr.msk.bf16.mxu1 %vm1611_vm1, %v1610_v0  ;;  %v453_v4 = vsel %vm389_vm0, %v399_v2, 0  ;;  %v400_v5 = vld [vmem:[%s311_s13 + $0x8] sm:$0xf]  ;;  %vm380_vm2 = vcmask 7168  }
  0x9d   : > { %1229 = vmatpush3.bf16.xpose.msra.mxu0 %v407_v3  ;;  %1235 = vmatpush3.bf16.xpose.msra.mxu1 %v453_v4  ;;  %v401_v6 = vld [vmem:[%s311_s13 + $0xc] sm:$0xf]  ;;  %v394_v7 = vld [vmem:[%s1891_s1] sm:$0xf]  ;;  %v395_v8 = vld [vmem:[%s1891_s1 + $0x4] sm:$0xf] }
  0x9e   : > { %1240 = vmatprep.subr.bf16.mxu0 %v1610_v0  ;;  %1246 = vmatprep.subr.bf16.mxu1 %v1610_v0  ;;  %v499_v9 = vsel %vm389_vm0, %v400_v5, 0  ;;  %v545_v10 = vsel %vm389_vm0, %v401_v6, 0  ;;  %v396_v11 = vld [vmem:[%s1891_s1 + $0x8] sm:$0xf]  ;;  %v397_v12 = vld [vmem:[%s1891_s1 + $0xc] sm:$0xf] }
  0x9f   : > { %1364 = vset.pattern.permute.xlu0 %v1612_v13  ;;  %1365 = vset.pattern.permute.xlu1 %v1612_v13  ;;  %v1613_v14 = vmov -inf   ;;  %385 = vst.msk [vmem:[#allocation3] sm:$0xff] %vm380_vm2, %v1610_v0  ;;  %386 = vst.msk [vmem:[#allocation3 + $0x8] sm:$0xff] %vm380_vm2, %v1610_v0  ;;  %v587_v15 = vld [vmem:[%s1908_s22] sm:$0x3]  ;;  %vm615_vm9 = vcmask 64512  }
  0xa0   : > { %381 = vst.msk [vmem:[#allocation2] sm:$0xff] %vm380_vm2, %v1613_v14  ;;  %382 = vst.msk [vmem:[#allocation2 + $0x8] sm:$0xff] %vm380_vm2, %v1613_v14  ;;  %v588_v16 = vld [vmem:[%s1908_s22 + $0x2] sm:$0x3]  ;;  %vm591_vm3 = vnez %v587_v15  ;;  %v589_v19 = vld [vmem:[%s1908_s22 + $0x4] sm:$0x3] }
  0xa1   : > { %383 = vst.msk [vmem:[#allocation2 + $0x10] sm:$0xff] %vm380_vm2, %v1613_v14  ;;  %384 = vst.msk [vmem:[#allocation2 + $0x18] sm:$0xff] %vm380_vm2, %v1613_v14  ;;  %vm592_vm4 = vnez %v588_v16  ;;  %v595_v17 = vsel %vm591_vm3, 16843009, %v1612_v13  ;;  %v590_v20 = vld [vmem:[%s1908_s22 + $0x6] sm:$0x3]  ;;  %vm593_vm5 = vnez %v589_v19 }
  0xa2   : > { %387 = vst.msk [vmem:[#allocation3 + $0x10] sm:$0xff] %vm380_vm2, %v1610_v0  ;;  %388 = vst.msk [vmem:[#allocation3 + $0x18] sm:$0xff] %vm380_vm2, %v1610_v0  ;;  %v596_v18 = vsel %vm592_vm4, 16843009, %v1612_v13  ;;  %v599_v21 = vunpack.c.0.s8 %v595_v17  ;;  %vm594_vm6 = vnez %v590_v20  ;;  %v597_v23 = vsel %vm593_vm5, 16843009, %v1612_v13 }
  0xa3   : > { %v600_v22 = vunpack.c.0.s8 %v596_v18  ;;  %v598_v24 = vsel %vm594_vm6, 16843009, %v1612_v13  ;;  %v601_v34 = vunpack.c.0.s8 %v597_v23  ;;  %v709_v4 = vld [vmem:[%s1903_s12] sm:$0xf]  ;;  %vm716_vm12 = vcmask 1043456   ;;  %s1614_s21 = smov 32  }
  0xa4   : > { %1231 = vmatmul.mubr.msk.bf16.vlgmr.msra.gmra.mrb[0].mxu0 %vm389_vm0, %v394_v7  ;;  %1237 = vmatmul.mubr.msk.bf16.vlgmr.msra.gmra.mrb[0].mxu1 %vm389_vm0, %v395_v8  ;;  %vm603_vm7 = vcmp.ne.s32.totalorder %v599_v21, 0  ;;  %v602_v35 = vunpack.c.0.s8 %v598_v24  ;;  %v718_v5 = vsel %vm716_vm12, %v709_v4, 0  ;;  %v710_v6 = vld [vmem:[%s1903_s12 + $0x4] sm:$0xf]  ;;  %v711_v19 = vld [vmem:[%s1903_s12 + $0x8] sm:$0xf] }
  0xa5   : > { %1241 = vmatpush3.bf16.xpose.msra.mxu0 %v499_v9  ;;  %1247 = vmatpush3.bf16.xpose.msra.mxu1 %v545_v10  ;;  %vm604_vm8 = vcmp.ne.s32.totalorder %v600_v22, 0  ;;  %vm605_vm10 = vcmp.ne.s32.totalorder %v601_v34, 0  ;;  %v764_v7 = vsel %vm716_vm12, %v710_v6, 0  ;;  %v810_v23 = vsel %vm716_vm12, %v711_v19, 0  ;;  %v712_v24 = vld [vmem:[%s1903_s12 + $0xc] sm:$0xf] }
  0xa6   : > { %1242 = vmatprep.mubr.msk.bf16.mxu0 %vm1611_vm1, %v1610_v0  ;;  %1248 = vmatprep.mubr.msk.bf16.mxu1 %vm1611_vm1, %v1610_v0  ;;  %vm606_vm11 = vcmp.ne.s32.totalorder %v602_v35, 0  ;;  %v899_v4 = vld [vmem:[#allocation4 + $0x8] sm:$0xff]  ;;  %v901_v19 = vld [vmem:[#allocation4 + $0x18] sm:$0xff]  ;;  %s1615_s27 = smov 64   ;;  %s1616_s24 = smov 96   ;;  %vm966_vm13 = vcmask 523520  }
  0xa7   : > { %1252 = vmatprep.subr.bf16.mxu0 %v1610_v0  ;;  %1258 = vmatprep.subr.bf16.mxu1 %v1610_v0  ;;  %v1978_v51 = vld [vmem:[#allocation2] sm:$0xff]  ;;  %v1983_v54 = vld [vmem:[#allocation2 + $0x8] sm:$0xff]  ;;  %s368_s17 = scalar_lea.vmem [#allocation13], %s1194_s7  ;;  %vm983_vm14 = vcmask 785920   ;;  %s1205_s29 = sshll.u32 %s1592_s18, 7  ;;  %vm1000_vm15 = vcmask 1048320  }
  0xa8   : > { %v1993_v58 = vld [vmem:[#allocation2 + $0x10] sm:$0xff]  ;;  %v2001_v62 = vld [vmem:[#allocation2 + $0x18] sm:$0xff]  ;;  %s1017_s14 = sshll.u32 %s368_s17, 4  ;;  %s2053_s11 = scalar_lea.hbm %s2106_s4, %s1205_s29  ;;  %s2055_s14 = int_to_ptr.vmem [resolvable:$true] %s1017_s14 }
  0xa9   : > { %s1003_s0 = scalar_lea.sflag [#allocation7], %s1887_s25  ;;  %s1510_s10 = scalar_lea.vmem %s2055_s14, 128 }
  0xaa   : > { %p1511_p0 = scmp.ne.s32.totalorder %s2055_s14, %s1510_s10  ;;  %p2140_p1 = scmp.ne.s32.totalorder %s2125_s28, 0 }
  0xab   : > { %s1617_s18 = smov [#allocation13]  }
  0xac   : > { %1243 = vmatmul.mubr.msk.bf16.vlgmr.msra.gmra.mrb[4].mxu0 %vm389_vm0, %v396_v11  ;;  %1249 = vmatmul.mubr.msk.bf16.vlgmr.msra.gmra.mrb[4].mxu1 %vm389_vm0, %v397_v12  ;;  %p1512_p6 = pnand %p1511_p0, %p2140_p1  ;;  %s1514_s30 = sshll.u32 %s1617_s18, 4  ;;  %s1515_s30 = int_to_ptr.vmem [resolvable:$false] %s1514_s30 }
  0xad   : > { %1254 = vmatprep.mubr.msk.bf16.mxu0 %vm1611_vm1, %v1610_v0  ;;  %1260 = vmatprep.mubr.msk.bf16.mxu1 %vm1611_vm1, %v1610_v0  ;;  %s1516_s26 = scalar_lea.vmem %s1515_s30, 256  ;;  %p1517_p11 = scmp.lt.s32.totalorder %s2055_s14, %s1515_s30 }
  0xae   : > { %1253 = vmatpush3.bf16.msra.mxu0 %v718_v5  ;;  %1259 = vmatpush3.bf16.msra.mxu1 %v764_v7  ;;  %p1513_p13 = pneg %p1512_p6  ;;  %p1518_p2 = scmp.lt.s32.totalorder %s1516_s26, %s1510_s10 }
  0xaf   : > { %1264 = vmatprep.subr.bf16.mxu0 %v1610_v0  ;;  %1270 = vmatprep.subr.bf16.mxu1 %v1610_v0 }
  0xb0   : > { %p1519_p5 = por %p1518_p2, %p1517_p11 }
  0xb2   : > { %p1520_p7 = pnand %p1519_p5, %p1513_p13 }
 0x177   : > { %v443_v25 = vpop.f32.mrb[0].mxu0  ;;  %v489_v26 = vpop.f32.mrb[0].mxu1 }
 0x178   : > { %v1968_v27 = vsel %vm603_vm7, -1e+09, %v443_v25  ;;  %v1232_v28 = vpop.f32.mrb[1].mxu0  ;;  %v1970_v29 = vsel %vm604_vm8, -1e+09, %v489_v26  ;;  %v1238_v30 = vpop.f32.mrb[1].mxu1 }
 0x179   : > { %v446_v31 = vpop.f32.mrb[2].mxu0  ;;  %v616_v32 = vsel %vm615_vm9, %v1968_v27, -inf  ;;  %v492_v33 = vpop.f32.mrb[2].mxu1  ;;  %v619_v38 = vsel %vm615_vm9, %v1970_v29, -inf  ;;  %v856_v28 = vsel %vm716_vm12, %v712_v24, 0 }
 0x17a   : > { %617 = vmax.xlane.f32.xlu0 %v616_v32  ;;  %v1233_v36 = vpop.f32.mrb[3].mxu0  ;;  %v1239_v37 = vpop.f32.mrb[3].mxu1 }
 0x17e   : > { %620 = vmax.xlane.f32.xlu0 %v619_v38 }
 0x17f   : > { %v535_v39 = vpop.f32.mrb[4].mxu0  ;;  %v581_v40 = vpop.f32.mrb[4].mxu1 }
 0x180   : > { %v609_v41 = vsel %vm605_vm10, -1e+09, %v535_v39  ;;  %v1244_v42 = vpop.f32.mrb[5].mxu0  ;;  %v610_v43 = vsel %vm606_vm11, -1e+09, %v581_v40  ;;  %v1250_v44 = vpop.f32.mrb[5].mxu1 }
 0x181   : > { %v538_v45 = vpop.f32.mrb[6].mxu0  ;;  %v622_v46 = vsel %vm615_vm9, %v609_v41, -inf  ;;  %v584_v47 = vpop.f32.mrb[6].mxu1  ;;  %v625_v50 = vsel %vm615_vm9, %v610_v43, -inf  ;;  %v677_v42 = vld [vmem:[#allocation3 + $0x8] sm:$0xff] }
 0x182   : > { %623 = vmax.xlane.f32.xlu1 %v622_v46  ;;  %v1245_v48 = vpop.f32.mrb[7].mxu0  ;;  %v1251_v49 = vpop.f32.mrb[7].mxu1  ;;  %v678_v45 = vld [vmem:[#allocation3 + $0x10] sm:$0xff] }
 0x183   : > { %v679_v49 = vld [vmem:[#allocation3 + $0x18] sm:$0xff] }
 0x186   : > { %626 = vmax.xlane.f32.xlu1 %v625_v50 }
 0x207   : > { %v618_v52 = vpop.xlane.xlu0 %617 }
 0x208   : > { %v1981_v53 = vmax.f32 %v1978_v51, %v618_v52 }
 0x20a   : > { %v632_v55 = vsub.f32 %v1978_v51, %v1981_v53  ;;  %934 = vst.msk [vmem:[#allocation2] sm:$0xff] %vm380_vm2, %v1981_v53  ;;  %646 = vperm.xlu0 %1364, %v1981_v53  }
 0x20b   : > { %v621_v56 = vpop.xlane.xlu0 %620 }
 0x20c   : > { %v1991_v57 = vmax.f32 %v1983_v54, %v621_v56 }
 0x20e   : > { %v633_v59 = vsub.f32 %v1983_v54, %v1991_v57  ;;  %935 = vst.msk [vmem:[#allocation2 + $0x8] sm:$0xff] %vm380_vm2, %v1991_v57  ;;  %651 = vperm.xlu1 %1365, %v1991_v57   ;;  %v676_v57 = vld [vmem:[#allocation3] sm:$0xff] }
 0x20f   : > { %v624_v60 = vpop.xlane.xlu1 %623 }
 0x210   : > { %v630_v61 = vmax.f32 %v1993_v58, %v624_v60 }
 0x212   : > { %v634_v63 = vsub.f32 %v1993_v58, %v630_v61  ;;  %936 = vst.msk [vmem:[#allocation2 + $0x10] sm:$0xff] %vm380_vm2, %v630_v61  ;;  %656 = vperm.xlu1 %1365, %v630_v61  }
 0x213   : > { %v627_v1 = vpop.xlane.xlu1 %626 }
 0x214   : > { %v631_v2 = vmax.f32 %v2001_v62, %v627_v1  ;;  %v640_v35 = vmul.f32 1.442695, %v634_v63 }
 0x216   : > { %v635_v3 = vsub.f32 %v2001_v62, %v631_v2  ;;  %937 = vst.msk [vmem:[#allocation2 + $0x18] sm:$0xff] %vm380_vm2, %v631_v2  ;;  %661 = vperm.xlu1 %1365, %v631_v2  }
 0x218   : > { %v642_v37 = vmul.f32 1.442695, %v635_v3 }
 0x289   : > { %v647_v8 = vpop.permute.xlu0 %646 }
 0x28a   : > { %v664_v9 = vsub.f32 %v1968_v27, %v647_v8 }
 0x28c   : > { %v668_v10 = vmul.f32 1.442695, %v664_v9 }
 0x28d   : > { %v652_v11 = vpop.permute.xlu1 %651 }
 0x28e   : > { %1366 = vpow2.f32 %v668_v10  ;;  %v665_v12 = vsub.f32 %v1970_v29, %v652_v11  ;;  %v900_v11 = vld [vmem:[#allocation4 + $0x10] sm:$0xff] }
 0x290   : > { %v670_v13 = vmul.f32 1.442695, %v665_v12 }
 0x291   : > { %v657_v14 = vpop.permute.xlu1 %656 }
 0x292   : > { %1368 = vpow2.f32 %v670_v13  ;;  %v666_v15 = vsub.f32 %v609_v41, %v657_v14  ;;  %v636_v41 = vmul.f32 1.442695, %v632_v55 }
 0x294   : > { %v672_v16 = vmul.f32 1.442695, %v666_v15 }
 0x295   : > { %v662_v17 = vpop.permute.xlu1 %661 }
 0x296   : > { %1370 = vpow2.f32 %v672_v16  ;;  %v667_v18 = vsub.f32 %v610_v43, %v662_v17 }
 0x298   : > { %v1367_v20 = vpop.eup %1366  ;;  %v674_v21 = vmul.f32 1.442695, %v667_v18 }
 0x299   : > { %v705_v22 = vpack.c.bf16 %v1367_v20, %v1367_v20  ;;  %v684_v36 = vsel %vm615_vm9, %v1367_v20, 0.0 }
 0x29a   : > { %1372 = vpow2.f32 %v674_v21 }
 0x29b   : > { %1255 = vmatmul.mubr.msk.bf16.vlgmr.msra.gmra.mrb[8].mxu0 %vm615_vm9, %v705_v22  ;;  %1374 = vpow2.f32 %v640_v35 }
 0x29c   : > { %v1369_v25 = vpop.eup %1368  ;;  %1265 = vmatpush3.bf16.msra.mxu0 %v810_v23  ;;  %1266 = vmatprep.mubr.msk.bf16.mxu0 %vm1611_vm1, %v1610_v0 }
 0x29d   : > { %v687_v26 = vsel %vm615_vm9, %v1369_v25, 0.0  ;;  %v706_v27 = vpack.c.bf16 %v1369_v25, %v1369_v25 }
 0x29e   : > { %688 = vadd.xlane.f32.xlu1 %v687_v26 }
 0x29f   : > { %1261 = vmatmul.mubr.msk.bf16.vlgmr.msra.gmra.mrb[8].mxu1 %vm615_vm9, %v706_v27 }
 0x2a0   : > { %v1371_v29 = vpop.eup %1370  ;;  %1271 = vmatpush3.bf16.msra.mxu1 %v856_v28  ;;  %1272 = vmatprep.mubr.msk.bf16.mxu1 %vm1611_vm1, %v1610_v0  ;;  %v638_v0 = vmul.f32 1.442695, %v633_v59 }
 0x2a1   : > { %v690_v30 = vsel %vm615_vm9, %v1371_v29, 0.0  ;;  %v707_v31 = vpack.c.bf16 %v1371_v29, %v1371_v29 }
 0x2a2   : > { %691 = vadd.xlane.f32.xlu0 %v690_v30  ;;  %1376 = vpow2.f32 %v638_v0 }
 0x2a3   : > { %1267 = vmatmul.mubr.msk.bf16.vlgmr.msra.gmra.mrb[12].mxu0 %vm615_vm9, %v707_v31  ;;  %1378 = vpow2.f32 %v642_v37  ;;  %v898_v37 = vld [vmem:[#allocation4] sm:$0xff] }
 0x2a4   : > { %v1373_v32 = vpop.eup %1372  ;;  %1380 = vpow2.f32 %v636_v41 }
 0x2a5   : > { %v693_v33 = vsel %vm615_vm9, %v1373_v32, 0.0  ;;  %v708_v34 = vpack.c.bf16 %v1373_v32, %v1373_v32  ;;  %v1375_v38 = vpop.eup %1374 }
 0x2a6   : > { %694 = vadd.xlane.f32.xlu1 %v693_v33  ;;  %v682_v47 = vmul.f32 %v1375_v38, %v678_v45 }
 0x2a7   : > { %1273 = vmatmul.mubr.msk.bf16.vlgmr.msra.gmra.mrb[12].mxu1 %vm615_vm9, %v708_v34 }
 0x2aa   : > { %685 = vadd.xlane.f32.xlu1 %v684_v36 }
 0x2ac   : > { %v1377_v39 = vpop.eup %1376 }
 0x2ad   : > { %v1379_v40 = vpop.eup %1378  ;;  %v681_v43 = vmul.f32 %v1377_v39, %v677_v42 }
 0x2ae   : > { %v683_v52 = vmul.f32 %v1379_v40, %v679_v49  ;;  %v1381_v54 = vpop.eup %1380 }
 0x2af   : > { %v680_v55 = vmul.f32 %v1381_v54, %v676_v57 }
 0x2b8   : > { %914 = vperm.xlu0 %1364, %v1375_v38  }
 0x2bb   : > { %909 = vperm.xlu1 %1365, %v1377_v39  }
 0x2bf   : > { %919 = vperm.xlu1 %1365, %v1379_v40  }
 0x32b   : > { %v689_v44 = vpop.xlane.xlu1 %688 }
 0x32c   : > { %v697_v46 = vadd.f32 %v689_v44, %v681_v43 }
 0x32e   : > { %702 = vst.msk [vmem:[#allocation3 + $0x8] sm:$0xff] %vm380_vm2, %v697_v46 }
 0x32f   : > { %v692_v48 = vpop.xlane.xlu0 %691 }
 0x330   : > { %v698_v50 = vadd.f32 %v692_v48, %v682_v47 }
 0x332   : > { %703 = vst.msk [vmem:[#allocation3 + $0x10] sm:$0xff] %vm380_vm2, %v698_v50 }
 0x333   : > { %v695_v56 = vpop.xlane.xlu1 %694 }
 0x334   : > { %v699_v51 = vadd.f32 %v695_v56, %v683_v52 }
 0x335   : > { %v952_v53 = vld [vmem:[#allocation3 + $0x8] sm:$0xff] }
 0x336   : > { %704 = vst.msk [vmem:[#allocation3 + $0x18] sm:$0xff] %vm380_vm2, %v699_v51  ;;  %1382 = vrcp.f32 %v952_v53 }
 0x337   : > { %v686_v58 = vpop.xlane.xlu1 %685  ;;  %v915_v12 = vpop.permute.xlu0 %914 }
 0x338   : > { %v696_v59 = vadd.f32 %v686_v58, %v680_v55  ;;  %v924_v17 = vmul.f32 %v915_v12, %v900_v11 }
 0x339   : > { %v969_v60 = vld [vmem:[#allocation3 + $0x10] sm:$0xff] }
 0x33a   : > { %701 = vst.msk [vmem:[#allocation3] sm:$0xff] %vm380_vm2, %v696_v59  ;;  %1384 = vrcp.f32 %v969_v60 }
 0x33b   : > { %v910_v5 = vpop.permute.xlu1 %909 }
 0x33c   : > { %v923_v9 = vmul.f32 %v910_v5, %v899_v4 }
 0x33d   : > { %v986_v61 = vld [vmem:[#allocation3 + $0x18] sm:$0xff] }
 0x33e   : > { %1386 = vrcp.f32 %v986_v61 }
 0x33f   : > { %v920_v20 = vpop.permute.xlu1 %919 }
 0x340   : > { %v1383_v62 = vpop.eup %1382  ;;  %v925_v25 = vmul.f32 %v920_v20, %v901_v19 }
 0x341   : > { %958 = vperm.xlu1 %1365, %v1383_v62   ;;  %v941_v63 = vld [vmem:[#allocation3] sm:$0xff] }
 0x342   : > { %1388 = vrcp.f32 %v941_v63 }
 0x344   : > { %v1385_v1 = vpop.eup %1384 }
 0x345   : > { %975 = vperm.xlu1 %1365, %v1385_v1  }
 0x348   : > { %v1387_v2 = vpop.eup %1386 }
 0x349   : > { %992 = vperm.xlu0 %1364, %v1387_v2   ;;  %904 = vperm.xlu1 %1365, %v1381_v54  }
 0x34c   : > { %v1389_v3 = vpop.eup %1388 }
 0x34d   : > { %946 = vperm.xlu0 %1364, %v1389_v3  }
 0x36e   : > { %v754_v6 = vpop.f32.mrb[8].mxu0 }
 0x36f   : > { %v1256_v7 = vpop.f32.mrb[9].mxu0 }
 0x370   : > { %v757_v8 = vpop.f32.mrb[10].mxu0 }
 0x371   : > { %v1257_v10 = vpop.f32.mrb[11].mxu0 }
 0x372   : > { %v800_v13 = vpop.f32.mrb[8].mxu1 }
 0x373   : > { %v927_v14 = vadd.f32 %v923_v9, %v800_v13  ;;  %v1262_v15 = vpop.f32.mrb[9].mxu1 }
 0x374   : > { %v803_v16 = vpop.f32.mrb[10].mxu1 }
 0x375   : > { %931 = vst.msk [vmem:[#allocation4 + $0x8] sm:$0xff] %vm389_vm0, %v927_v14  ;;  %v1263_v18 = vpop.f32.mrb[11].mxu1 }
 0x376   : > { %v846_v21 = vpop.f32.mrb[12].mxu0 }
 0x377   : > { %v928_v22 = vadd.f32 %v924_v17, %v846_v21  ;;  %v1268_v23 = vpop.f32.mrb[13].mxu0 }
 0x378   : > { %v849_v24 = vpop.f32.mrb[14].mxu0 }
 0x379   : > { %932 = vst.msk [vmem:[#allocation4 + $0x10] sm:$0xff] %vm389_vm0, %v928_v22  ;;  %v1269_v26 = vpop.f32.mrb[15].mxu0 }
 0x37a   : > { %v892_v27 = vpop.f32.mrb[12].mxu1 }
 0x37b   : > { %v929_v28 = vadd.f32 %v925_v25, %v892_v27  ;;  %v1274_v29 = vpop.f32.mrb[13].mxu1 }
 0x37c   : > { %v895_v30 = vpop.f32.mrb[14].mxu1  ;;  %v955_v32 = vld [vmem:[#allocation4 + $0x8] sm:$0xff] }
 0x37d   : > { %933 = vst.msk [vmem:[#allocation4 + $0x18] sm:$0xff] %vm389_vm0, %v929_v28  ;;  %v1275_v31 = vpop.f32.mrb[15].mxu1 }
 0x380   : > { %v972_v36 = vld [vmem:[#allocation4 + $0x10] sm:$0xff] }
 0x384   : > { %v989_v38 = vld [vmem:[#allocation4 + $0x18] sm:$0xff] }
 0x3c0   : > { %v959_v33 = vpop.permute.xlu1 %958 }
 0x3c1   : > { %v961_v34 = vmul.f32 %v959_v33, %v955_v32 }
 0x3c3   : > { %963 = vrot.lane.b32.xlu1 %v961_v34, %s1614_s21 }
 0x3c4   : > { %v976_v35 = vpop.permute.xlu1 %975 }
 0x3c5   : > { %v978_v0 = vmul.f32 %v976_v35, %v972_v36 }
 0x3c7   : > { %980 = vrot.lane.b32.xlu0 %v978_v0, %s1615_s27 }
 0x3c8   : > { %v993_v39 = vpop.permute.xlu0 %992  ;;  %v905_v40 = vpop.permute.xlu1 %904 }
 0x3c9   : > { %v995_v41 = vmul.f32 %v993_v39, %v989_v38  ;;  %v922_v42 = vmul.f32 %v905_v40, %v898_v37 }
 0x3cb   : > { %v926_v43 = vadd.f32 %v922_v42, %v754_v6  ;;  %997 = vrot.lane.b32.xlu1 %v995_v41, %s1616_s24 }
 0x3cc   : > { %v947_v45 = vpop.permute.xlu0 %946 }
 0x3cd   : > { %930 = vst.msk [vmem:[#allocation4] sm:$0xff] %vm389_vm0, %v926_v43 }
 0x3d4   : > { %v943_v44 = vld [vmem:[#allocation4] sm:$0xff] }
 0x3d5   : > { %v949_v46 = vmul.f32 %v947_v45, %v943_v44 }
 0x3d7   : > { %950 = vst.msk [vmem:[%s368_s17] sm:$0xff] %vm389_vm0, %v949_v46 }
 0x435   : > { %v964_v47 = vpop.permute.xlu1 %963 }
 0x436   : > { %967 = vst.msk [vmem:[%s368_s17] sm:$0xff] %vm966_vm13, %v964_v47 }
 0x439   : > { %v981_v48 = vpop.permute.xlu0 %980 }
 0x43a   : > { %984 = vst.msk [vmem:[%s368_s17] sm:$0xff] %vm983_vm14, %v981_v48 }
 0x43d   : > { %v998_v49 = vpop.permute.xlu1 %997 }
 0x43e   : > { %1001 = vst.msk [vmem:[%s368_s17] sm:$0xff] %vm1000_vm15, %v998_v49 }
 0x43f   : > { %1523 = shalt.err (!%p1520_p7)
}
 0x440   : > { %s1524_s25 = scalar_lea.hbm %s2053_s11, 128  ;;  %s1528_s5 = scalar_lea.hbm %s2106_s4, 256 }
 0x441   : > { %p1525_p3 = scmp.ne.s32.totalorder %s2053_s11, %s1524_s25  ;;  %p1529_p12 = scmp.lt.u32.totalorder %s2053_s11, %s2106_s4 }
 0x442   : > { %p1530_p4 = scmp.lt.u32.totalorder %s1528_s5, %s1524_s25  ;;  %p1532_p0 = scmp.lt.u32.totalorder %s1524_s25, %s2053_s11 }
 0x443   : > { %p1526_p10 = pnand %p1525_p3, %p2140_p1 }
 0x444   : > { %p1531_p8 = por %p1530_p4, %p1529_p12 }
 0x445   : > { %p1527_p9 = pneg %p1526_p10 }
 0x446   : > { %p1533_p6 = por %p1532_p0, %p1531_p8 }
 0x448   : > { %p1534_p13 = pnand %p1533_p6, %p1527_p9 }
 0x44a   : > { %1537 = shalt.err (!%p1534_p13)
}
 0x44b   : > { %1284 = dma.vmem_to_hbm [thread:$0]  (%p2140_p1), %s2055_s14, 128, %s2053_s11, %s1003_s0  }
 0x44c PF: > { %s2141_s7 = sld [smem:[#allocation22_spill]]  ;;  %s2142_s12 = sld [smem:[#allocation19_spill]] }
 0x44d   : > { %s1029_s20 = sand.u32 1, %s1580_s15  }
 0x44e   : > { %s1030_s22 = scalar_lea.sflag [#allocation7], %s1029_s20 }
 0x452   : > { %p2143_p11 = scmp.ne.s32.totalorder %s2141_s7, 0  ;;  %p2144_p2 = scmp.ge.s32.totalorder %s2142_s12, 2 }
 0x454   : > { %p1300_p5 = pnand %p2144_p2, %p2143_p11 }
 0x456   : > { %1575 = dma.done.wait (!%p1300_p5), %s1030_s22, 128  }
 0x457   : > { %1577 = vsyncadd (!%p1300_p5), %s1030_s22, 4294967168  ;;  %s26_s20 = sadd.s32 1, %s2142_s12   ;;  %s2145_s21 = sld [smem:[#allocation18_spill]] }
 0x458   : > { %p23_p7 = scmp.ge.s32.totalorder %s26_s20, 4   ;;  %s2146_s17 = sld [smem:[#allocation21_spill]] }
 0x459   : > { %s2147_s28 = sld [smem:[#allocation20_spill]]  ;;  %s2148_s15 = smov %s1584_s16 }
 0x45a   : > { %s2150_s18 = smov %s1596_s19  ;;  %25 = sbr.rel (!%p23_p7) target bundleno = 13 (0xd), region = 132 }
 0x45d   : > { %s2149_s16 = smov %s2145_s21 }
 0x45f   : > { %s2151_s19 = smov %s2147_s28 }
 0x461   :  { %1035 = vsyncpa [#allocation6], 1 }
 0x462   :  { %1037 = vsyncpa [#allocation6 + $0x1], 1 }
 0x463   :  { %1038 = vsyncpa [#allocation9], 1 }
 0x464   :  { %1040 = vsyncpa [#allocation9 + $0x1], 1 }
 0x465   :  { %1041 = vsyncpa [#allocation12], 1 }
 0x466   :  { %1043 = vsyncpa [#allocation12 + $0x1], 1 }
 0x467   :  { %1044 = vsyncpa [#allocation7], 1 }
 0x468   :  { %1046 = vsyncpa [#allocation7 + $0x1], 1 }

</bundles_post_ra>
